<compile_context>
chip_gen: v5e
topology: v5e:2x2
jax: 0.10.0
libtpu: 0.0.40
codegen_flags: <defaults>
</compile_context>

<pallas_src>
import jax
import jax.numpy as jnp
from jax.experimental import pallas as pl
from jax.experimental.pallas import tpu as pltpu


# ----------------------------------------------------------------------------- helpers
def _round_up(n, m):
    return ((n + m - 1) // m) * m


def _cdiv(a, b):
    return (a + b - 1) // b


def _vmem_capacity_bytes():
    try:
        return int(pltpu.get_tpu_info().vmem_capacity_bytes)
    except Exception:
        return 64 << 20  # conservative per-core default (v7x)


def _mxu_inner_align():
    # v6e / v7x MXUs are 2x256^2: align matmul K / hidden dims to 256 so a pass
    # does not run half-empty.  <= v5 chips have 128-wide MXUs; keep 128 there.
    try:
        kind = jax.devices()[0].device_kind.lower()
        if any(f"v{v}" in kind for v in (2, 3, 4, 5)):
            return 128
        return 256
    except Exception:
        return 128


def _resident_spec(shape, index_map):
    # Grid-invariant operand: single VMEM buffer (its block index never changes,
    # default double-buffering would just waste VMEM).  Fall back gracefully if
    # this Pallas build does not expose pipeline_mode.
    try:
        return pl.BlockSpec(shape, index_map, pipeline_mode=pl.Buffered(1))
    except (TypeError, AttributeError):
        return pl.BlockSpec(shape, index_map)


# ----------------------------------------------------------------------------- kernels
def _hybrid_kernel_resident(x_ref, w_enc_ref, b_enc_ref, w_cls_ref, b_cls_ref, o_ref):
    # --- encoder (frozen / no-grad; inference only): bf16 MXU, f32 accumulate ---
    h = jnp.dot(x_ref[...], w_enc_ref[...], preferred_element_type=jnp.float32)
    h = jnp.maximum(h + b_enc_ref[...], 0.0)  # f32 epilogue (v5e has no bf16 VPU)
    # --- classifier head ---
    logits = jnp.dot(h.astype(jnp.bfloat16), w_cls_ref[...],
                     preferred_element_type=jnp.float32)
    o_ref[...] = (logits + b_cls_ref[...]).astype(o_ref.dtype)


def _hybrid_kernel_ktiled(x_ref, w_enc_ref, b_enc_ref, w_cls_ref, b_cls_ref,
                          o_ref, acc_ref):
    # Encoder matmul K-tiled over Din (for weights that do not fit v7x's VMEM).
    k = pl.program_id(1)

    @pl.when(k == 0)
    def _init():
        acc_ref[...] = jnp.zeros_like(acc_ref)

    acc_ref[...] += jnp.dot(x_ref[...], w_enc_ref[...],
                            preferred_element_type=jnp.float32)

    @pl.when(k == pl.num_programs(1) - 1)
    def _finalize():
        h = jnp.maximum(acc_ref[...] + b_enc_ref[...], 0.0)
        logits = jnp.dot(h.astype(jnp.bfloat16), w_cls_ref[...],
                         preferred_element_type=jnp.float32)
        o_ref[...] = (logits + b_cls_ref[...]).astype(o_ref.dtype)


# ----------------------------------------------------------------------------- wrappers
def prepare_params(w_enc, b_enc, w_cls, b_cls, *, force_k_tile=None):
    """Pad / bf16-cast the frozen parameters ONCE; reuse across forward calls.

    Hoists the weight pad/cast HBM traffic out of the inference hot path.
    Weights stored [in, out]; zero padding keeps the math exact (padded x cols
    hit zero w_enc rows; padded h cols are ReLU(0)=0 and hit zero w_cls rows).
    """
    Din, H = w_enc.shape
    H2, C = w_cls.shape
    assert H2 == H
    inner = _mxu_inner_align()
    Din_p = _round_up(Din, inner if Din > 128 else 128)
    H_p = _round_up(H, inner if H > 128 else 128)
    C_p = _round_up(C, 128)

    vmem_cap = _vmem_capacity_bytes()
    weight_bytes = Din_p * H_p * 2 + H_p * C_p * 2 + (H_p + C_p) * 4

    if force_k_tile is None and weight_bytes <= int(0.45 * vmem_cap):
        tk = Din_p  # encoder weight fully resident
    else:
        # K-tile w_enc so one double-buffered bf16 (tk, H_p) tile stays within
        # ~1/8 of this chip's VMEM (v7x 64 MiB fallback path).
        if force_k_tile is not None:
            tk = int(force_k_tile)
            assert tk % 128 == 0
        else:
            budget_rows = int(vmem_cap // 8) // (2 * H_p * 2)
            tk = max(inner, (budget_rows // inner) * inner)
        tk = min(tk, Din_p)
        Din_p = _round_up(Din_p, tk)  # K axis must be a whole number of tiles

    w_enc_p = jnp.zeros((Din_p, H_p), jnp.bfloat16).at[:Din, :H].set(
        w_enc.astype(jnp.bfloat16))
    b_enc_p = jnp.zeros((1, H_p), jnp.float32).at[:, :H].set(
        b_enc.reshape(1, H).astype(jnp.float32))
    w_cls_p = jnp.zeros((H_p, C_p), jnp.bfloat16).at[:H, :C].set(
        w_cls.astype(jnp.bfloat16))
    b_cls_p = jnp.zeros((1, C_p), jnp.float32).at[:, :C].set(
        b_cls.reshape(1, C).astype(jnp.float32))

    return {
        "w_enc": w_enc_p, "b_enc": b_enc_p, "w_cls": w_cls_p, "b_cls": b_cls_p,
        "Din": Din, "H": H, "C": C,
        "Din_p": Din_p, "H_p": H_p, "C_p": C_p, "tk": tk,
        "vmem_cap": vmem_cap,
    }


def hybrid_forward(x, params, *, tm=512):
    """x: [B, Din] (f32 or bf16) -> logits [B, C] f32."""
    B, Din = x.shape
    assert Din == params["Din"]
    Din_p, H_p, C_p, tk = params["Din_p"], params["H_p"], params["C_p"], params["tk"]
    C = params["C"]
    vmem_cap = params["vmem_cap"]
    k_steps = Din_p // tk

    # ----- VMEM footprint model (resident weights + per-row working set) -----
    if k_steps == 1:
        w_resident = Din_p * H_p * 2 + H_p * C_p * 2 + (H_p + C_p) * 4
        row_bytes = 2 * tk * 2                        # x tile (bf16, 2 buffers)
    else:
        w_resident = 2 * tk * H_p * 2 + H_p * C_p * 2 + (H_p + C_p) * 4
        row_bytes = 2 * tk * 2 + H_p * 4              # + f32 accumulator scratch
    row_bytes += 2 * C_p * 4                          # out tile (f32, 2 buffers)
    row_bytes += H_p * 4 + H_p * 2 + C_p * 4          # h (f32 + bf16 cast) + logits
    avail = int(0.8 * vmem_cap) - w_resident
    # TODO(synk): if `avail <= 0` (classifier weight alone exceeds VMEM) a second
    # tiling level over H / C would be required; not implemented here.
    tm_cap = max(8, (max(avail, 0) // max(row_bytes, 1)) // 8 * 8)

    # ----- batch tiling: padding waste < 8 rows, >= 2 steps when possible ----
    tm_target = max(8, min(_round_up(tm, 8), tm_cap, 1024))
    n_steps = max(1, min(_cdiv(B, 8), max(2, _cdiv(B, tm_target))))
    TM = _round_up(_cdiv(B, n_steps), 8)
    B_p = n_steps * TM

    # x: cast to bf16 (halves the streaming DMA); zero-pad only when needed.
    if (B_p, Din_p) == (B, Din):
        x_p = x.astype(jnp.bfloat16)
    else:
        x_p = jnp.zeros((B_p, Din_p), jnp.bfloat16).at[:B, :Din].set(
            x.astype(jnp.bfloat16))

    # Per-generation VMEM clamp: never below the actual footprint, never above
    # ~90% of this chip's physical VMEM (128 MiB on v5e/v6e, 64 MiB on v7x).
    bytes_needed = w_resident + TM * row_bytes
    vmem_limit = int(min(max(int(1.4 * bytes_needed), 16 << 20),
                         int(0.9 * vmem_cap)))
    vmem_limit = max(vmem_limit, bytes_needed)

    flops = 2 * B_p * (Din_p * H_p + H_p * C_p)
    bytes_accessed = (B_p * Din_p * 2 + Din_p * H_p * 2 + H_p * C_p * 2
                      + (H_p + C_p) * 4 + B_p * C_p * 4)
    cost = pl.CostEstimate(flops=flops, transcendentals=0,
                           bytes_accessed=bytes_accessed)

    if k_steps == 1:
        grid = (n_steps,)
        in_specs = [
            pl.BlockSpec((TM, Din_p), lambda i: (i, 0)),      # activations (streamed)
            _resident_spec((Din_p, H_p), lambda i: (0, 0)),   # encoder weight
            _resident_spec((1, H_p), lambda i: (0, 0)),       # encoder bias
            _resident_spec((H_p, C_p), lambda i: (0, 0)),     # classifier weight
            _resident_spec((1, C_p), lambda i: (0, 0)),       # classifier bias
        ]
        out_specs = pl.BlockSpec((TM, C_p), lambda i: (i, 0))
        scratch = []
        kernel = _hybrid_kernel_resident
        dims = ("parallel",)
    else:
        grid = (n_steps, k_steps)                             # K axis last, "arbitrary"
        in_specs = [
            pl.BlockSpec((TM, tk), lambda i, k: (i, k)),      # activations (streamed)
            pl.BlockSpec((tk, H_p), lambda i, k: (k, 0)),     # encoder weight (K-tiled)
            _resident_spec((1, H_p), lambda i, k: (0, 0)),
            _resident_spec((H_p, C_p), lambda i, k: (0, 0)),
            _resident_spec((1, C_p), lambda i, k: (0, 0)),
        ]
        out_specs = pl.BlockSpec((TM, C_p), lambda i, k: (i, 0))
        scratch = [pltpu.VMEM((TM, H_p), jnp.float32)]
        kernel = _hybrid_kernel_ktiled
        dims = ("parallel", "arbitrary")

    out_p = pl.pallas_call(
        kernel,
        out_shape=jax.ShapeDtypeStruct((B_p, C_p), jnp.float32),
        grid_spec=pltpu.PrefetchScalarGridSpec(
            num_scalar_prefetch=0,
            grid=grid,
            in_specs=in_specs,
            out_specs=out_specs,
            scratch_shapes=scratch,
        ),
        compiler_params=pltpu.CompilerParams(
            dimension_semantics=dims,
            vmem_limit_bytes=vmem_limit,
        ),
        cost_estimate=cost,
    )(x_p, params["w_enc"], params["b_enc"], params["w_cls"], params["b_cls"])

    # Slice away batch + class padding.
    return out_p[:B, :C]


def reference_forward(x, w_enc, b_enc, w_cls, b_cls):
    h = jnp.maximum(x @ w_enc + b_enc, 0.0)
    return h @ w_cls + b_cls


# ----------------------------------------------------------------------------- test
if __name__ == "__main__":
    key = jax.random.PRNGKey(0)
    kx, k1, k2, k3, k4, kx2, k5, k6, k7, k8 = jax.random.split(key, 10)

    # --- test 1: resident-weight path (small shapes from the module spec) ----
    B, Din, H, C = 8, 32, 64, 10
    x = jax.random.normal(kx, (B, Din), dtype=jnp.float32)
    w_enc = jax.random.normal(k1, (Din, H), dtype=jnp.float32) * 0.1
    b_enc = jax.random.normal(k2, (1, H), dtype=jnp.float32) * 0.1
    w_cls = jax.random.normal(k3, (H, C), dtype=jnp.float32) * 0.1
    b_cls = jax.random.normal(k4, (1, C), dtype=jnp.float32) * 0.1

    params = prepare_params(w_enc, b_enc, w_cls, b_cls)   # hoisted: once, reused
    out = hybrid_forward(x, params)
    jax.block_until_ready(out)
    ref = reference_forward(x, w_enc, b_enc, w_cls, b_cls)
    assert out.shape == (B, C)
    # bf16 MXU operands with f32 accumulation -> loosened tolerance vs f32 ref.
    assert jnp.allclose(out, ref, atol=2e-2, rtol=2e-2), "resident path mismatch"

    # --- test 2: forced K-tiled fallback (exercises the v7x / big-weight route)
    B2, Din2, H2, C2 = 16, 384, 96, 10
    x2 = jax.random.normal(kx2, (B2, Din2), dtype=jnp.float32)
    w_enc2 = jax.random.normal(k5, (Din2, H2), dtype=jnp.float32) * 0.05
    b_enc2 = jax.random.normal(k6, (1, H2), dtype=jnp.float32) * 0.05
    w_cls2 = jax.random.normal(k7, (H2, C2), dtype=jnp.float32) * 0.05
    b_cls2 = jax.random.normal(k8, (1, C2), dtype=jnp.float32) * 0.05

    params2 = prepare_params(w_enc2, b_enc2, w_cls2, b_cls2, force_k_tile=128)
    out2 = hybrid_forward(x2, params2)
    jax.block_until_ready(out2)
    ref2 = reference_forward(x2, w_enc2, b_enc2, w_cls2, b_cls2)
    assert out2.shape == (B2, C2)
    assert jnp.allclose(out2, ref2, atol=6e-2, rtol=6e-2), "k-tiled path mismatch"

    print("KERNEL_OK")
</pallas_src>

<mosaic_0001>
module attributes {stable_mosaic.version = 11 : i64} {
  func.func @_hybrid_kernel_resident(%arg0: i32, %arg1: memref<8x128xbf16, #tpu.memory_space<vmem>>, %arg2: memref<128x128xbf16, #tpu.memory_space<vmem>>, %arg3: memref<1x128xf32, #tpu.memory_space<vmem>>, %arg4: memref<128x128xbf16, #tpu.memory_space<vmem>>, %arg5: memref<1x128xf32, #tpu.memory_space<vmem>>, %arg6: memref<8x128xf32, #tpu.memory_space<vmem>>) attributes {dimension_semantics = [#tpu.dimension_semantics<parallel>], iteration_bounds = array<i64: 1>, scalar_prefetch = 0 : i64, scratch_operands = 0 : i64, tpu.core_type = #tpu.core_type<tc>, window_params = [{transform_indices = @transform_0, window_bounds = array<i64: 8, 128>}, {pipeline_mode = #tpu.pipeline_mode<synchronous>, transform_indices = @transform_1, window_bounds = array<i64: 128, 128>}, {pipeline_mode = #tpu.pipeline_mode<synchronous>, transform_indices = @transform_2, window_bounds = array<i64: 1, 128>}, {pipeline_mode = #tpu.pipeline_mode<synchronous>, transform_indices = @transform_3, window_bounds = array<i64: 128, 128>}, {pipeline_mode = #tpu.pipeline_mode<synchronous>, transform_indices = @transform_4, window_bounds = array<i64: 1, 128>}, {transform_indices = @transform_5, window_bounds = array<i64: 8, 128>}]} {
    %c0 = arith.constant 0 : index
    %c0_0 = arith.constant 0 : index
    %0 = vector.load %arg1[%c0, %c0_0] : memref<8x128xbf16, #tpu.memory_space<vmem>>, vector<8x128xbf16>
    %c0_1 = arith.constant 0 : index
    %c0_2 = arith.constant 0 : index
    %1 = vector.load %arg2[%c0_1, %c0_2] : memref<128x128xbf16, #tpu.memory_space<vmem>>, vector<128x128xbf16>
    %cst = arith.constant dense<0.000000e+00> : vector<8x128xf32>
    %2 = tpu.matmul %0, %1, %cst {dimension_numbers = #tpu.dot_dimension_numbers<[1], [0], [0], [1], [0, 0, 1, 1], [], []>} : vector<8x128xbf16>, vector<128x128xbf16>, vector<8x128xf32> -> vector<8x128xf32>
    %c0_3 = arith.constant 0 : index
    %c0_4 = arith.constant 0 : index
    %3 = vector.load %arg3[%c0_3, %c0_4] : memref<1x128xf32, #tpu.memory_space<vmem>>, vector<1x128xf32>
    %4 = vector.broadcast %3 : vector<1x128xf32> to vector<8x128xf32>
    %5 = arith.addf %2, %4 : vector<8x128xf32>
    %cst_5 = arith.constant 0.000000e+00 : f32
    %6 = vector.broadcast %cst_5 : f32 to vector<8x128xf32>
    %7 = arith.maximumf %5, %6 : vector<8x128xf32>
    %8 = arith.truncf %7 : vector<8x128xf32> to vector<8x128xbf16>
    %c0_6 = arith.constant 0 : index
    %c0_7 = arith.constant 0 : index
    %9 = vector.load %arg4[%c0_6, %c0_7] : memref<128x128xbf16, #tpu.memory_space<vmem>>, vector<128x128xbf16>
    %cst_8 = arith.constant dense<0.000000e+00> : vector<8x128xf32>
    %10 = tpu.matmul %8, %9, %cst_8 {dimension_numbers = #tpu.dot_dimension_numbers<[1], [0], [0], [1], [0, 0, 1, 1], [], []>} : vector<8x128xbf16>, vector<128x128xbf16>, vector<8x128xf32> -> vector<8x128xf32>
    %c0_9 = arith.constant 0 : index
    %c0_10 = arith.constant 0 : index
    %11 = vector.load %arg5[%c0_9, %c0_10] : memref<1x128xf32, #tpu.memory_space<vmem>>, vector<1x128xf32>
    %12 = vector.broadcast %11 : vector<1x128xf32> to vector<8x128xf32>
    %13 = arith.addf %10, %12 : vector<8x128xf32>
    %c0_11 = arith.constant 0 : index
    %c0_12 = arith.constant 0 : index
    %14 = vector.load %arg6[%c0_11, %c0_12] : memref<8x128xf32, #tpu.memory_space<vmem>>, vector<8x128xf32>
    tpu.vector_store %arg6[%c0_11, %c0_12], %13 {strides = array<i32>} : memref<8x128xf32, #tpu.memory_space<vmem>>, vector<8x128xf32>,
    return
  }
  func.func @transform_0(%arg0: i32) -> (i32, i32) {
    %c0_i32 = arith.constant 0 : i32
    %c0_i32_0 = arith.constant 0 : i32
    return %arg0, %c0_i32 : i32, i32
  }
  func.func @transform_1(%arg0: i32) -> (i32, i32) {
    %c0_i32 = arith.constant 0 : i32
    %c0_i32_0 = arith.constant 0 : i32
    %c0_i32_1 = arith.constant 0 : i32
    return %c0_i32, %c0_i32_0 : i32, i32
  }
  func.func @transform_2(%arg0: i32) -> (i32, i32) {
    %c0_i32 = arith.constant 0 : i32
    %c0_i32_0 = arith.constant 0 : i32
    %c0_i32_1 = arith.constant 0 : i32
    return %c0_i32, %c0_i32_0 : i32, i32
  }
  func.func @transform_3(%arg0: i32) -> (i32, i32) {
    %c0_i32 = arith.constant 0 : i32
    %c0_i32_0 = arith.constant 0 : i32
    %c0_i32_1 = arith.constant 0 : i32
    return %c0_i32, %c0_i32_0 : i32, i32
  }
  func.func @transform_4(%arg0: i32) -> (i32, i32) {
    %c0_i32 = arith.constant 0 : i32
    %c0_i32_0 = arith.constant 0 : i32
    %c0_i32_1 = arith.constant 0 : i32
    return %c0_i32, %c0_i32_0 : i32, i32
  }
  func.func @transform_5(%arg0: i32) -> (i32, i32) {
    %c0_i32 = arith.constant 0 : i32
    %c0_i32_0 = arith.constant 0 : i32
    return %arg0, %c0_i32 : i32, i32
  }
}

</mosaic_0001>

<bundles_post_ra>
// kernel: tpu_custom_call.1
= control target key start
LH: loop header
LB: loop body
LE: loop exit
PB: predicated region body
PF: predicated region fallthrough
CT: control target
= control target key end

     0   :  { %10 = vsyncpa [#allocation3], 0  ;;  %s494_s0 = inlined_call_operand.hbm [shape: bf16[8,128], index: 0, kind: input, shape index: {}]   ;;  %s495_s1 = inlined_call_operand.hbm [shape: bf16[128,128], index: 1, kind: input, shape index: {}]   ;;  %s496_s2 = inlined_call_operand.vmem [shape: f32[1,128], index: 2, kind: input, shape index: {}]   ;;  %s497_s3 = inlined_call_operand.hbm [shape: bf16[128,128], index: 3, kind: input, shape index: {}]   ;;  %s498_s4 = inlined_call_operand.vmem [shape: f32[1,128], index: 4, kind: input, shape index: {}]   ;;  %s499_s5 = inlined_call_operand.hbm [shape: f32[8,128], index: 5, kind: output, shape index: {}]  }
   0x1   :  { %11 = vsyncpa [#allocation6], 0  ;;  %s28_s20 = sshll.u32 %s495_s1, 4  ;;  %s29_s20 = int_to_ptr.hbm [resolvable:$true] %s28_s20 }
   0x2   :  { %12 = vsyncpa [#allocation4], 0  ;;  %s440_s21 = smov [#allocation5]   ;;  %s18_s25 = sshll.u32 %s494_s0, 4  ;;  %s19_s25 = int_to_ptr.hbm [resolvable:$true] %s18_s25 }
   0x3   :  { %s30_s22 = sshll.u32 %s440_s21, 4  ;;  %s441_s26 = smov 64   ;;  %s31_s22 = int_to_ptr.vmem [resolvable:$true] %s30_s22 }
   0x4   :  { %s442_s27 = smov 4   ;;  %s443_s28 = smov [#allocation2]  }
   0x5   :  { %36 = dma.hbm_to_vmem [thread:$0]  %s29_s20, 1024, %s31_s22, [#allocation6], %s441_s26, %s441_s26, %s442_s27  }
   0x6   :  { %s20_s29 = sshll.u32 %s443_s28, 4  ;;  %s43_s7 = sshll.u32 %s497_s3, 4  ;;  %s21_s29 = int_to_ptr.vmem [resolvable:$true] %s20_s29  ;;  %s44_s7 = int_to_ptr.hbm [resolvable:$true] %s43_s7 }
   0x7   :  { %23 = dma.hbm_to_vmem [thread:$0]  %s19_s25, 64, %s21_s29, [#allocation3]  }
   0x8   :  { %s444_s1 = smov [#allocation7]  }
   0x9   :  { %s45_s8 = sshll.u32 %s444_s1, 4  ;;  %s46_s8 = int_to_ptr.vmem [resolvable:$true] %s45_s8 }
   0xa   :  { %51 = dma.hbm_to_vmem [thread:$0]  %s44_s7, 1024, %s46_s8, [#allocation6], %s441_s26, %s441_s26, %s442_s27  }
   0xb   :  { %434 = dma.done.wait [#allocation3], 64  }
   0xc   :  { %435 = vsyncadd [#allocation3], 4294967232 }
   0xd   :  { %436 = dma.done.wait [#allocation6], 2048  }
   0xe   :  { %437 = vsyncadd [#allocation6], 4294965248  ;;  %v321_v0 = vld [vmem:[#allocation5 + $0x38] sm:$0xff]  ;;  %v320_v1 = vld [vmem:[#allocation5 + $0x30] sm:$0xff]  ;;  %s445_s11 = smov [#allocation8]   ;;  %s239_s15 = sshll.u32 %s499_s5, 4  ;;  %s240_s15 = int_to_ptr.hbm [resolvable:$true] %s239_s15 }
   0xf   :  { %135 = vmatpush.bf16.msra.mxu0 %v321_v0  ;;  %v329_v2 = vld [vmem:[#allocation7 + $0x38] sm:$0xff]  ;;  %v328_v3 = vld [vmem:[#allocation7 + $0x30] sm:$0xff]  ;;  %v319_v4 = vld [vmem:[#allocation5 + $0x28] sm:$0xff]  ;;  %s237_s12 = sshll.u32 %s445_s11, 4  ;;  %s238_s12 = int_to_ptr.vmem [resolvable:$true] %s237_s12 }
  0x10   :  { %218 = vmatpush.bf16.msra.mxu1 %v329_v2  ;;  %v327_v5 = vld [vmem:[#allocation7 + $0x28] sm:$0xff]  ;;  %v318_v6 = vld [vmem:[#allocation5 + $0x20] sm:$0xff]  ;;  %v317_v8 = vld [vmem:[#allocation5 + $0x18] sm:$0xff] }
  0x11   :  { %v326_v7 = vld [vmem:[#allocation7 + $0x20] sm:$0xff]  ;;  %v325_v9 = vld [vmem:[#allocation7 + $0x18] sm:$0xff]  ;;  %v316_v10 = vld [vmem:[#allocation5 + $0x10] sm:$0xff] }
  0x12   :  { %v324_v11 = vld [vmem:[#allocation7 + $0x10] sm:$0xff]  ;;  %v315_v12 = vld [vmem:[#allocation5 + $0x8] sm:$0xff]  ;;  %v314_v13 = vld [vmem:[#allocation5] sm:$0xff] }
  0x13   :  { %136 = vmatpush.bf16.msra.mxu0 %v320_v1  ;;  %v66_v14 = vld [vmem:[#allocation2] sm:$0xf]  ;;  %v323_v15 = vld [vmem:[#allocation7 + $0x8] sm:$0xff]  ;;  %v322_v16 = vld [vmem:[#allocation7] sm:$0xff] }
  0x14   :  { %219 = vmatpush.bf16.msra.mxu1 %v328_v3  ;;  %v336_v17 = vld [vmem:[%s496_s2] ss:$0 sm:$0xff] }
  0x15   :  { %v337_v23 = vld [vmem:[%s498_s4] ss:$0 sm:$0xff] }
  0x17   :  { %137 = vmatpush.bf16.msra.mxu0 %v319_v4 }
  0x18   :  { %220 = vmatpush.bf16.msra.mxu1 %v327_v5 }
  0x1b   :  { %138 = vmatpush.bf16.msra.mxu0 %v318_v6 }
  0x1c   :  { %221 = vmatpush.bf16.msra.mxu1 %v326_v7 }
  0x1f   :  { %139 = vmatpush.bf16.msra.mxu0 %v317_v8 }
  0x20   :  { %222 = vmatpush.bf16.msra.mxu1 %v325_v9 }
  0x23   :  { %140 = vmatpush.bf16.msra.mxu0 %v316_v10 }
  0x24   :  { %223 = vmatpush.bf16.msra.mxu1 %v324_v11 }
  0x27   :  { %141 = vmatpush.bf16.msra.mxu0 %v315_v12 }
  0x28   :  { %224 = vmatpush.bf16.msra.mxu1 %v323_v15 }
  0x2b   :  { %142 = vmatpush.bf16.msra.mxu0 %v314_v13 }
  0x2c   :  { %225 = vmatpush.bf16.msra.mxu1 %v322_v16 }
  0x2e   :  { %143 = vmatmul.bf16.vlgmr.msra.gmra.mxu0 %v66_v14 }
  0xab   :  { %v144_v18 = vpop.f32.mrf.mxu0 }
  0xac   :  { %v145_v19 = vadd.f32 %v336_v17, %v144_v18 }
  0xae   :  { %v148_v20 = vmax.f32 %v145_v19, 0.0 }
  0xb0   :  { %v149_v21 = vpack.c.bf16 %v148_v20, %v148_v20 }
  0xb2   :  { %226 = vmatmul.bf16.vlgmr.msra.gmra.mxu1 %v149_v21 }
  0xb3   :  { %v146_v22 = vpop.f32.mrf.mxu0 }
 0x12f   :  { %v227_v24 = vpop.f32.mrf.mxu1 }
 0x130   :  { %v228_v25 = vadd.f32 %v337_v23, %v227_v24 }
 0x132   :  { %231 = vst [vmem:[#allocation8] sm:$0xff] %v228_v25 }
 0x133   :  { %242 = dma.vmem_to_hbm [thread:$0]  %s238_s12, 128, %s240_s15, [#allocation4]  }
 0x137   :  { %v229_v26 = vpop.f32.mrf.mxu1 }
 0x138   :  { %438 = dma.done.wait [#allocation4], 128  }
 0x139   :  { %439 = vsyncadd [#allocation4], 4294967168 }
 0x13a   :  { %247 = vsyncpa [#allocation3], 1 }
 0x13b   :  { %248 = vsyncpa [#allocation6], 1 }
 0x13c   :  { %249 = vsyncpa [#allocation4], 1 }

</bundles_post_ra>
